<compile_context>
chip_gen: v6e
topology: v6e:2x2x1
jax: 0.10.0
libtpu: 0.0.40
codegen_flags: <defaults>
</compile_context>

<pallas_src>
import jax
import jax.numpy as jnp
from jax.experimental import pallas as pl
from jax.experimental.pallas import tpu as pltpu

OUT_DIM = 5          # module's fixed output_dim
PAD_OUT = 128        # lane-dense padded class axis (one vreg lane width)
_BIAS_PAD = -1e30    # finite large-negative pad (avoid -inf -> NaN in softmax)


def _ffnn_kernel(x_ref, w1_ref, b1_ref, w2_ref, b2_ref, out_ref):
    # Hidden layer: x @ W1 + b1, ReLU  (MXU matmul, f32 accumulate; ReLU on VPU)
    h = jnp.dot(x_ref[...], w1_ref[...], preferred_element_type=jnp.float32)
    h = jnp.maximum(h + b1_ref[...], 0.0)           # (TB, H) + (1, H) broadcast

    # Dropout: identity (eval mode).

    # Output layer: h @ W2_pad + b2_pad -> (TB, 128) padded logits.
    # Padded columns have zero weights and -1e30 bias, so they are numerically
    # inert through max/exp/sum below.
    o = jnp.dot(h, w2_ref[...], preferred_element_type=jnp.float32)
    o = o + b2_ref[...]                              # (TB, 128) + (1, 128)

    # LogSoftmax over the class axis, numerically stable.
    m = jnp.max(o, axis=1, keepdims=True)
    s = o - m
    lse = jnp.log(jnp.sum(jnp.exp(s), axis=1, keepdims=True))
    out_ref[...] = (s - lse).astype(out_ref.dtype)   # lane-dense 128-wide store


def _round_up(x, m):
    return ((x + m - 1) // m) * m


def prepare_params(w1, b1, w2, b2):
    """One-time param prep (hoisted out of the forward path).

    w1: (H, D) torch layout; b1: (H,); w2: (5, H); b2: (5,).
    Returns (w1_t, b1_2d, w2_pad, b2_pad) ready for the kernel.
    """
    w1 = jnp.asarray(w1, jnp.float32)
    b1 = jnp.asarray(b1, jnp.float32)
    w2 = jnp.asarray(w2, jnp.float32)
    b2 = jnp.asarray(b2, jnp.float32)

    hidden = w1.shape[0]
    w1_t = w1.T                                         # (D, H)
    b1_2d = b1.reshape(1, hidden)                       # (1, H)

    # Pad class axis 5 -> 128: exact zeros in W2 pad columns, -1e30 bias pad.
    w2_pad = jnp.zeros((hidden, PAD_OUT), jnp.float32)
    w2_pad = w2_pad.at[:, :OUT_DIM].set(w2.T)           # (H, 128)
    b2_pad = jnp.full((1, PAD_OUT), _BIAS_PAD, jnp.float32)
    b2_pad = b2_pad.at[:, :OUT_DIM].set(b2.reshape(1, OUT_DIM))
    return w1_t, b1_2d, w2_pad, b2_pad


def ffnn_forward(x, params, *, tb=1024):
    """x: (B, D) float32; params from prepare_params(). Returns (B, 5) log-probs."""
    w1_t, b1_2d, w2_pad, b2_pad = params
    x = jnp.asarray(x, jnp.float32)
    B, D = x.shape
    H = w1_t.shape[1]

    # Batch tile: large multiple of 8, but never larger than the (8-rounded) batch.
    tb = max(8, min(_round_up(tb, 8), _round_up(B, 8)))
    B_pad = _round_up(B, tb)
    if B_pad != B:
        x = jnp.pad(x, ((0, B_pad - B), (0, 0)))        # zero rows are harmless
    grid = (B_pad // tb,)

    out_padded = pl.pallas_call(
        _ffnn_kernel,
        out_shape=jax.ShapeDtypeStruct((B_pad, PAD_OUT), jnp.float32),
        grid_spec=pltpu.PrefetchScalarGridSpec(
            num_scalar_prefetch=0,
            grid=grid,
            in_specs=[
                # x: tiled along the batch axis (auto double-buffered).
                pl.BlockSpec((tb, D), lambda i: (i, 0)),
                # Weights/biases: full blocks, same index every step -> VMEM-resident.
                pl.BlockSpec((D, H), lambda i: (0, 0)),
                pl.BlockSpec((1, H), lambda i: (0, 0)),
                pl.BlockSpec((H, PAD_OUT), lambda i: (0, 0)),
                pl.BlockSpec((1, PAD_OUT), lambda i: (0, 0)),
            ],
            out_specs=pl.BlockSpec((tb, PAD_OUT), lambda i: (i, 0)),
        ),
        compiler_params=pltpu.CompilerParams(
            # Batch axis is embarrassingly parallel -> megacore sharding on v7x.
            dimension_semantics=("parallel",),
        ),
    )(x, w1_t, b1_2d, w2_pad, b2_pad)

    # Strip batch padding and the lane padding of the class axis.
    return out_padded[:B, :OUT_DIM]


def _reference(x, w1, b1, w2, b2):
    h = jnp.maximum(x @ w1.T + b1, 0.0)
    o = h @ w2.T + b2
    return jax.nn.log_softmax(o, axis=1)


if __name__ == "__main__":
    # Small shapes consistent with the module's forward.
    batch, input_dim, hidden, out_dim = 8, 32, 32, 5

    key = jax.random.PRNGKey(0)
    k_x, k_w1, k_b1, k_w2, k_b2 = jax.random.split(key, 5)

    # Deterministic parameter init (PyTorch-Linear-style uniform bounds).
    bound1 = 1.0 / (input_dim ** 0.5)
    bound2 = 1.0 / (hidden ** 0.5)
    x = jax.random.normal(k_x, (batch, input_dim), dtype=jnp.float32)
    w1 = jax.random.uniform(k_w1, (hidden, input_dim), jnp.float32, -bound1, bound1)
    b1 = jax.random.uniform(k_b1, (hidden,), jnp.float32, -bound1, bound1)
    w2 = jax.random.uniform(k_w2, (out_dim, hidden), jnp.float32, -bound2, bound2)
    b2 = jax.random.uniform(k_b2, (out_dim,), jnp.float32, -bound2, bound2)

    params = prepare_params(w1, b1, w2, b2)   # one-time prep (transpose + pad)

    # Case 1: batch multiple of 8.
    out = jax.block_until_ready(ffnn_forward(x, params))
    ref = _reference(x, w1, b1, w2, b2)
    assert out.shape == (batch, out_dim)
    assert jnp.allclose(out, ref, atol=1e-5, rtol=1e-5), "mismatch vs reference"

    # Case 2: ragged batch (exercises the batch-padding path).
    x2 = jax.random.normal(jax.random.PRNGKey(1), (batch + 2, input_dim), jnp.float32)
    out2 = jax.block_until_ready(ffnn_forward(x2, params))
    ref2 = _reference(x2, w1, b1, w2, b2)
    assert out2.shape == (batch + 2, out_dim)
    assert jnp.allclose(out2, ref2, atol=1e-5, rtol=1e-5), "mismatch vs reference (ragged)"

    print("KERNEL_OK")
</pallas_src>

<mosaic_0001>
module attributes {stable_mosaic.version = 11 : i64} {
  func.func @_ffnn_kernel(%arg0: i32, %arg1: memref<8x32xf32, #tpu.memory_space<vmem>>, %arg2: memref<32x32xf32, #tpu.memory_space<vmem>>, %arg3: memref<1x32xf32, #tpu.memory_space<vmem>>, %arg4: memref<32x128xf32, #tpu.memory_space<vmem>>, %arg5: memref<1x128xf32, #tpu.memory_space<vmem>>, %arg6: memref<8x128xf32, #tpu.memory_space<vmem>>) attributes {dimension_semantics = [#tpu.dimension_semantics<parallel>], iteration_bounds = array<i64: 1>, scalar_prefetch = 0 : i64, scratch_operands = 0 : i64, tpu.core_type = #tpu.core_type<tc>, window_params = [{transform_indices = @transform_0, window_bounds = array<i64: 8, 32>}, {pipeline_mode = #tpu.pipeline_mode<synchronous>, transform_indices = @transform_1, window_bounds = array<i64: 32, 32>}, {pipeline_mode = #tpu.pipeline_mode<synchronous>, transform_indices = @transform_2, window_bounds = array<i64: 1, 32>}, {pipeline_mode = #tpu.pipeline_mode<synchronous>, transform_indices = @transform_3, window_bounds = array<i64: 32, 128>}, {pipeline_mode = #tpu.pipeline_mode<synchronous>, transform_indices = @transform_4, window_bounds = array<i64: 1, 128>}, {transform_indices = @transform_5, window_bounds = array<i64: 8, 128>}]} {
    %c0 = arith.constant 0 : index
    %c0_0 = arith.constant 0 : index
    %0 = vector.load %arg1[%c0, %c0_0] : memref<8x32xf32, #tpu.memory_space<vmem>>, vector<8x32xf32>
    %c0_1 = arith.constant 0 : index
    %c0_2 = arith.constant 0 : index
    %1 = vector.load %arg2[%c0_1, %c0_2] : memref<32x32xf32, #tpu.memory_space<vmem>>, vector<32x32xf32>
    %cst = arith.constant dense<0.000000e+00> : vector<8x32xf32>
    %2 = tpu.matmul %0, %1, %cst {dimension_numbers = #tpu.dot_dimension_numbers<[1], [0], [0], [1], [0, 0, 1, 1], [], []>} : vector<8x32xf32>, vector<32x32xf32>, vector<8x32xf32> -> vector<8x32xf32>
    %c0_3 = arith.constant 0 : index
    %c0_4 = arith.constant 0 : index
    %3 = vector.load %arg3[%c0_3, %c0_4] : memref<1x32xf32, #tpu.memory_space<vmem>>, vector<1x32xf32>
    %4 = vector.broadcast %3 : vector<1x32xf32> to vector<8x32xf32>
    %5 = arith.addf %2, %4 : vector<8x32xf32>
    %cst_5 = arith.constant 0.000000e+00 : f32
    %6 = vector.broadcast %cst_5 : f32 to vector<8x32xf32>
    %7 = arith.maximumf %5, %6 : vector<8x32xf32>
    %c0_6 = arith.constant 0 : index
    %c0_7 = arith.constant 0 : index
    %8 = vector.load %arg4[%c0_6, %c0_7] : memref<32x128xf32, #tpu.memory_space<vmem>>, vector<32x128xf32>
    %cst_8 = arith.constant dense<0.000000e+00> : vector<8x128xf32>
    %9 = tpu.matmul %7, %8, %cst_8 {dimension_numbers = #tpu.dot_dimension_numbers<[1], [0], [0], [1], [0, 0, 1, 1], [], []>} : vector<8x32xf32>, vector<32x128xf32>, vector<8x128xf32> -> vector<8x128xf32>
    %c0_9 = arith.constant 0 : index
    %c0_10 = arith.constant 0 : index
    %10 = vector.load %arg5[%c0_9, %c0_10] : memref<1x128xf32, #tpu.memory_space<vmem>>, vector<1x128xf32>
    %11 = vector.broadcast %10 : vector<1x128xf32> to vector<8x128xf32>
    %12 = arith.addf %9, %11 : vector<8x128xf32>
    %cst_11 = arith.constant dense<0xFF800000> : vector<8xf32>
    %13 = vector.multi_reduction <maximumf>, %12, %cst_11 [1] : vector<8x128xf32> to vector<8xf32>
    %14 = vector.shape_cast %13 : vector<8xf32> to vector<8x1xf32>
    %15 = vector.broadcast %14 : vector<8x1xf32> to vector<8x128xf32>
    %16 = arith.subf %12, %15 : vector<8x128xf32>
    %17 = math.exp %16 : vector<8x128xf32>
    %cst_12 = arith.constant dense<0.000000e+00> : vector<8xf32>
    %18 = vector.multi_reduction <add>, %17, %cst_12 [1] : vector<8x128xf32> to vector<8xf32>
    %19 = vector.shape_cast %18 : vector<8xf32> to vector<8x1xf32>
    %20 = math.log %19 : vector<8x1xf32>
    %21 = vector.broadcast %20 : vector<8x1xf32> to vector<8x128xf32>
    %22 = arith.subf %16, %21 : vector<8x128xf32>
    %c0_13 = arith.constant 0 : index
    %c0_14 = arith.constant 0 : index
    %23 = vector.load %arg6[%c0_13, %c0_14] : memref<8x128xf32, #tpu.memory_space<vmem>>, vector<8x128xf32>
    tpu.vector_store %arg6[%c0_13, %c0_14], %22 {strides = array<i32>} : memref<8x128xf32, #tpu.memory_space<vmem>>, vector<8x128xf32>,
    return
  }
  func.func @transform_0(%arg0: i32) -> (i32, i32) {
    %c0_i32 = arith.constant 0 : i32
    %c0_i32_0 = arith.constant 0 : i32
    return %arg0, %c0_i32 : i32, i32
  }
  func.func @transform_1(%arg0: i32) -> (i32, i32) {
    %c0_i32 = arith.constant 0 : i32
    %c0_i32_0 = arith.constant 0 : i32
    %c0_i32_1 = arith.constant 0 : i32
    return %c0_i32, %c0_i32_0 : i32, i32
  }
  func.func @transform_2(%arg0: i32) -> (i32, i32) {
    %c0_i32 = arith.constant 0 : i32
    %c0_i32_0 = arith.constant 0 : i32
    %c0_i32_1 = arith.constant 0 : i32
    return %c0_i32, %c0_i32_0 : i32, i32
  }
  func.func @transform_3(%arg0: i32) -> (i32, i32) {
    %c0_i32 = arith.constant 0 : i32
    %c0_i32_0 = arith.constant 0 : i32
    %c0_i32_1 = arith.constant 0 : i32
    return %c0_i32, %c0_i32_0 : i32, i32
  }
  func.func @transform_4(%arg0: i32) -> (i32, i32) {
    %c0_i32 = arith.constant 0 : i32
    %c0_i32_0 = arith.constant 0 : i32
    %c0_i32_1 = arith.constant 0 : i32
    return %c0_i32, %c0_i32_0 : i32, i32
  }
  func.func @transform_5(%arg0: i32) -> (i32, i32) {
    %c0_i32 = arith.constant 0 : i32
    %c0_i32_0 = arith.constant 0 : i32
    return %arg0, %c0_i32 : i32, i32
  }
}

</mosaic_0001>

<bundles_post_ra>
// kernel: tpu_custom_call.1
= control target key start
LH: loop header
LB: loop body
LE: loop exit
PB: predicated region body
PF: predicated region fallthrough
CT: control target
= control target key end

     0   :  { %10 = vsyncpa [#allocation3], 0  ;;  %s450_s0 = inlined_call_operand.hbm [shape: f32[8,32], index: 0, kind: input, shape index: {}]   ;;  %s451_s1 = inlined_call_operand.hbm [shape: f32[32,32], index: 1, kind: input, shape index: {}]   ;;  %s452_s2 = inlined_call_operand.vmem [shape: f32[1,32], index: 2, kind: input, shape index: {}]   ;;  %s453_s3 = inlined_call_operand.hbm [shape: f32[32,128], index: 3, kind: input, shape index: {}]   ;;  %s454_s4 = inlined_call_operand.vmem [shape: f32[1,128], index: 4, kind: input, shape index: {}]   ;;  %s455_s5 = inlined_call_operand.hbm [shape: f32[8,128], index: 5, kind: output, shape index: {}]  }
   0x1   :  { %11 = vsyncpa [#allocation6], 0 }
   0x2   :  { %12 = vsyncpa [#allocation4], 0  ;;  %s392_s18 = smov [#allocation5]  }
   0x3   :  { %s28_s19 = sshll.u32 %s392_s18, 4  ;;  %s29_s19 = int_to_ptr.vmem [resolvable:$true] %s28_s19 }
   0x4   :  { %s314_s20 = scalar_lea.vmem %s29_s19, 512  ;;  %p319_p1 = scmp.lt.s32.totalorder %s29_s19, %s29_s19 }
   0x5   :  { %p315_p0 = scmp.ne.s32.totalorder %s29_s19, %s314_s20  ;;  %p320_p2 = scmp.lt.s32.totalorder %s314_s20, %s314_s20 }
   0x7   :  { %p321_p3 = por %p320_p2, %p319_p1 }
   0x9   :  { %p322_p4 = pnand %p321_p3, %p315_p0 }
   0xb   :  { %325 = shalt.err (!%p322_p4)
}
   0xc   :  { %s393_s21 = smov 128   ;;  %s394_s22 = smov 8  }
   0xd   :  { %34 = dma.hbm_to_vmem [thread:$0]  %s451_s1, 512, %s29_s19, [#allocation6], %s393_s21, %s393_s21, %s394_s22  }
   0xe   :  { %s395_s25 = smov [#allocation2]   ;;  %s396_s27 = smov [#allocation7]  }
   0xf   :  { %s19_s26 = sshll.u32 %s395_s25, 4  ;;  %s42_s28 = sshll.u32 %s396_s27, 4  ;;  %s20_s26 = int_to_ptr.vmem [resolvable:$true] %s19_s26  ;;  %s43_s28 = int_to_ptr.vmem [resolvable:$true] %s42_s28 }
  0x10   :  { %s334_s29 = scalar_lea.vmem %s20_s26, 128  ;;  %p339_p6 = scmp.lt.s32.totalorder %s20_s26, %s20_s26 }
  0x11   :  { %p335_p5 = scmp.ne.s32.totalorder %s20_s26, %s334_s29  ;;  %p340_p7 = scmp.lt.s32.totalorder %s334_s29, %s334_s29 }
  0x13   :  { %p341_p8 = por %p340_p7, %p339_p6 }
  0x15   :  { %p342_p9 = pnand %p341_p8, %p335_p5 }
  0x17   :  { %345 = shalt.err (!%p342_p9)
}
  0x18   :  { %22 = dma.hbm_to_vmem [thread:$0]  %s450_s0, 128, %s20_s26, [#allocation3]  }
  0x19   :  { %s354_s7 = scalar_lea.vmem %s43_s28, 512  ;;  %p359_p11 = scmp.lt.s32.totalorder %s43_s28, %s43_s28 }
  0x1a   :  { %p355_p10 = scmp.ne.s32.totalorder %s43_s28, %s354_s7  ;;  %p360_p12 = scmp.lt.s32.totalorder %s354_s7, %s354_s7 }
  0x1c   :  { %p361_p13 = por %p360_p12, %p359_p11 }
  0x1e   :  { %p362_p0 = pnand %p361_p13, %p355_p10 }
  0x20   :  { %365 = shalt.err (!%p362_p0)
}
  0x21   :  { %48 = dma.hbm_to_vmem [thread:$0]  %s453_s3, 512, %s43_s28, [#allocation6], %s393_s21, %s393_s21, %s394_s22  }
  0x22   :  { %386 = dma.done.wait [#allocation3], 128  }
  0x23   :  { %387 = vsyncadd [#allocation3], 4294967168 }
  0x24   :  { %388 = dma.done.wait [#allocation6], 1024  }
  0x25   :  { %389 = vsyncadd [#allocation6], 4294966272  ;;  %v397_v0 = vmov 0.0   ;;  %vm398_vm0 = vmmov 0   ;;  %v64_v1 = vld [vmem:[#allocation5 + $0x18] sm:$0xff]  ;;  %v63_v2 = vld [vmem:[#allocation5 + $0x10] sm:$0xff] }
  0x26   :  { %272 = vmatprep.subr.mxu0 %v397_v0  ;;  %280 = vmatprep.mubr.msk.f32.mxu0 %vm398_vm0, %v397_v0  ;;  %v150_v3 = vld [vmem:[#allocation7 + $0x18] sm:$0xff]  ;;  %v62_v4 = vld [vmem:[#allocation5 + $0x8] sm:$0xff]  ;;  %v61_v5 = vld [vmem:[#allocation5] sm:$0xff]  ;;  %vm72_vm1 = vcmask 261120  }
  0x27   :  { %283 = vmatprep.subr.mxu1 %v397_v0  ;;  %291 = vmatprep.mubr.msk.f32.mxu1 %vm398_vm0, %v397_v0  ;;  %v60_v6 = vld [vmem:[#allocation2] sm:$0xff]  ;;  %v149_v7 = vld [vmem:[#allocation7 + $0x10] sm:$0xff]  ;;  %v148_v8 = vld [vmem:[#allocation7 + $0x8] sm:$0xff] }
  0x28   :  { %273 = vmatpush3.msra.mxu0 %v64_v1  ;;  %284 = vmatpush3.msra.mxu1 %v150_v3  ;;  %v147_v9 = vld [vmem:[#allocation7] sm:$0xff]  ;;  %v258_v10 = vld [vmem:[%s452_s2] ss:$0 sm:$0xff]  ;;  %s399_s2 = smov [#allocation8]  }
  0x29   :  { %274 = vmatprep.subr.mxu0 %v397_v0  ;;  %285 = vmatprep.subr.mxu1 %v397_v0  ;;  %v260_v15 = vld [vmem:[%s454_s4] ss:$0 sm:$0xff]  ;;  %s248_s11 = sshll.u32 %s399_s2, 4  ;;  %s249_s11 = int_to_ptr.vmem [resolvable:$true] %s248_s11 }
  0x2a   :  { %275 = vmatpush3.msra.mxu0 %v63_v2  ;;  %286 = vmatpush3.msra.mxu1 %v149_v7  ;;  %s366_s4 = scalar_lea.vmem %s249_s11, 128  ;;  %p371_p2 = scmp.lt.s32.totalorder %s249_s11, %s249_s11 }
  0x2b   :  { %276 = vmatprep.subr.mxu0 %v397_v0  ;;  %287 = vmatprep.subr.mxu1 %v397_v0  ;;  %p367_p1 = scmp.ne.s32.totalorder %s249_s11, %s366_s4  ;;  %p372_p3 = scmp.lt.s32.totalorder %s366_s4, %s366_s4 }
  0x2c   :  { %277 = vmatpush3.msra.mxu0 %v62_v4  ;;  %288 = vmatpush3.msra.mxu1 %v148_v8 }
  0x2d   :  { %278 = vmatprep.subr.mxu0 %v397_v0  ;;  %289 = vmatprep.subr.mxu1 %v397_v0  ;;  %p373_p4 = por %p372_p3, %p371_p2 }
  0x2e   :  { %279 = vmatpush3.msra.mxu0 %v61_v5  ;;  %290 = vmatpush3.msra.mxu1 %v147_v9 }
  0x2f   :  { %281 = vmatmul.mubr.msk.f32.vlgmr.msra.gmra.mxu0 %vm72_vm1, %v60_v6  ;;  %p374_p5 = pnand %p373_p4, %p367_p1 }
  0xef   :  { %v142_v11 = vpop.f32.mrf.mxu0 }
  0xf0   :  { %v143_v12 = vadd.f32 %v258_v10, %v142_v11 }
  0xf1   :  { %v282_v13 = vpop.f32.mrf.mxu0 }
  0xf2   :  { %v146_v14 = vmax.f32 %v143_v12, 0.0 }
  0xf4   :  { %292 = vmatmul.mubr.msk.f32.vlgmr.msra.gmra.mxu1 %vm72_vm1, %v146_v14 }
 0x1b4   :  { %v227_v16 = vpop.f32.mrf.mxu1 }
 0x1b5   :  { %v228_v17 = vadd.f32 %v260_v15, %v227_v16 }
 0x1b6   :  { %v293_v18 = vpop.f32.mrf.mxu1 }
 0x1b7   :  { %231 = vmax.xlane.f32.xlu0 %v228_v17 }
 0x240   :  { %v232_v19 = vpop.xlane.xlu0 %231 }
 0x241   :  { %v233_v20 = vsub.f32 %v228_v17, %v232_v19 }
 0x243   :  { %v234_v21 = vmul.f32 1.442695, %v233_v20 }
 0x245   :  { %302 = vpow2.f32 %v234_v21 }
 0x252   :  { %v303_v22 = vpop.eup %302 }
 0x253   :  { %236 = vadd.xlane.f32.xlu0 %v303_v22 }
 0x2dc   :  { %v237_v23 = vpop.xlane.xlu0 %236 }
 0x2dd   :  { %304 = vlog2.f32 %v237_v23 }
 0x2ea   :  { %v305_v24 = vpop.eup %304 }
 0x2eb   :  { %v239_v25 = vmul.f32 0.6931472, %v305_v24 }
 0x2ed   :  { %v240_v26 = vsub.f32 %v233_v20, %v239_v25 }
 0x2ef   :  { %241 = vst [vmem:[#allocation8] sm:$0xff] %v240_v26 }
 0x2f0   :  { %377 = shalt.err (!%p374_p5)
}
 0x2f1   :  { %251 = dma.vmem_to_hbm [thread:$0]  %s249_s11, 128, %s455_s5, [#allocation4]  }
 0x2f2   :  { %390 = dma.done.wait [#allocation4], 128  }
 0x2f3   :  { %391 = vsyncadd [#allocation4], 4294967168 }
 0x2f4   :  { %255 = vsyncpa [#allocation3], 1 }
 0x2f5   :  { %256 = vsyncpa [#allocation6], 1 }
 0x2f6   :  { %257 = vsyncpa [#allocation4], 1 }

</bundles_post_ra>
